<compile_context>
chip_gen: v7x
topology: tpu7x:2x2x1
jax: 0.10.0
libtpu: 0.0.40
codegen_flags: <defaults>
</compile_context>

<pallas_src>
import functools

import jax
import jax.numpy as jnp
from jax import lax
from jax.experimental import pallas as pl
from jax.experimental.pallas import tpu as pltpu


def _next_pow2(n):
    return 1 << max(int(n) - 1, 0).bit_length()


def _bmm(w, x):
    """Apply a shared (m, k) weight to a (B, k, n) batch -> (B, m, n) on the MXU."""
    wb = jnp.broadcast_to(w[None], (x.shape[0],) + w.shape)
    return lax.dot_general(wb, x, (((2,), (1,)), ((0,), (0,))),
                           preferred_element_type=jnp.float32)


def _roll_time(v, shift):
    """Lane-axis (time) roll of a (B, R, T) array; batch/state stay in rows."""
    b, r, t = v.shape
    return pltpu.roll(v.reshape(b * r, t), shift=shift, axis=1).reshape(b, r, t)


def lds_kernel(x_ref, h0_ref, apow_ref, bt_ref, ct_ref, m_ref, out_ref,
               hbuf_ref, *, chunk, kx):
    # x_ref:    (B_BLK, d_in, T_pad)   time-minor input block (zero time padding)
    # h0_ref:   (d_state, 1)           initial state (shared across batch)
    # apow_ref: (d_state, chunk)       column t = A ** (t + 1)
    # bt_ref:   (d_state, d_in)        B^T
    # ct_ref:   (d_out, d_state)       C^T
    # m_ref:    (max(kx,1), d_out, d_in)  M[:, :, k] stacked over k
    # out_ref:  (B_BLK, d_out, T_pad)
    # hbuf_ref: VMEM scratch (B_BLK, d_state, T_pad): holds u_t @ B, then h_t
    b_blk, _, t_pad = x_ref.shape
    d_state = hbuf_ref.shape[1]
    n_chunks = t_pad // chunk

    x = x_ref[...]                                        # (B, d_in, T_pad)

    # 1) All input projections u_t @ B in one batched MXU call (time on lanes).
    hbuf_ref[...] = _bmm(bt_ref[...], x)                  # (B, d_state, T_pad)

    # Loop invariants hoisted out of the carry-serialized chunk loop.
    apow = apow_ref[...]                                  # (d_state, chunk)
    apow_b = apow[None]                                   # (1, d_state, chunk)
    offsets = [1 << i for i in range((chunk - 1).bit_length())]
    a_ds = [apow[:, d - 1:d][None] for d in offsets]      # A^d, each (1, d_state, 1)
    col_c = lax.broadcasted_iota(jnp.int32, (1, 1, chunk), 2)
    carry0 = jnp.broadcast_to(h0_ref[...][None], (b_blk, d_state, 1))

    def scan_chunk(v, carry):
        # In-register inclusive scan: v[..., t] <- sum_{s<=t} A^(t-s) * v[..., s]
        # (log-depth Hillis-Steele: XLU lane roll + masked VPU FMA), then add
        # the chunk-carry term A^(t+1) * carry.
        for a_d, d in zip(a_ds, offsets):
            v = v + jnp.where(col_c >= d, a_d * _roll_time(v, d), 0.0)
        return v + apow_b * carry                         # (B, d_state, chunk)

    # 2) Diagonal recurrence h_t = A * h_{t-1} + (u_t @ B): one full lane tile
    #    of every batch row per step; only the chunk-end state is carried.
    if n_chunks == 1:
        hbuf_ref[...] = scan_chunk(hbuf_ref[...], carry0)
    else:
        def chunk_body(c, carry):
            start = pl.multiple_of(c * chunk, chunk)      # 128-aligned lane offset
            h_all = scan_chunk(hbuf_ref[:, :, pl.ds(start, chunk)], carry)
            hbuf_ref[:, :, pl.ds(start, chunk)] = h_all
            return h_all[:, :, chunk - 1:chunk]           # new carry (B, d_state, 1)

        lax.fori_loop(0, n_chunks, chunk_body, carry0, unroll=min(n_chunks, 8))

    # 3) Readout + causal AR as kx+1 accumulated batched matmuls (no lane
    #    concatenation); output (B, d_out, T_pad) is lane-dense in time.
    res = _bmm(ct_ref[...], hbuf_ref[...])                # C^T @ h
    col_t = lax.broadcasted_iota(jnp.int32, (1, 1, t_pad), 2)
    for k in range(kx):
        if k >= t_pad:
            break                                         # shift falls off the sequence
        xs = x if k == 0 else jnp.where(col_t >= k, _roll_time(x, k), 0.0)
        res = res + _bmm(m_ref[k], xs)                    # M_k @ (x shifted by k)
    out_ref[...] = res.astype(out_ref.dtype)


def lds_forward(x, h0, A, B, C, M):
    bsz, T, d_in = x.shape
    d_state = A.shape[0]
    d_out = C.shape[1]
    kx = 0 if M is None else M.shape[2]

    # Scan chunk = one lane tile of timesteps (<= 128); T_pad keeps chunks whole,
    # so dynamic lane offsets inside the kernel are always 0 or multiples of 128.
    chunk = min(128, max(8, _next_pow2(T)))
    T_pad = ((T + chunk - 1) // chunk) * chunk

    # Time-minor layout (bsz, d_in, T_pad); causal ops ignore the zero tail.
    xp = x.astype(jnp.float32)
    if T_pad != T:
        xp = jnp.pad(xp, ((0, 0), (0, T_pad - T), (0, 0)))
    xt = jnp.transpose(xp, (0, 2, 1))

    Af = A.astype(jnp.float32)
    Apow = Af[:, None] ** jnp.arange(1, chunk + 1, dtype=jnp.float32)[None, :]
    h0c = jnp.reshape(h0.astype(jnp.float32), (d_state, 1))
    Bt = jnp.transpose(B.astype(jnp.float32))              # (d_state, d_in)
    Ct = jnp.transpose(C.astype(jnp.float32))              # (d_out, d_state)
    Ms = (jnp.transpose(M.astype(jnp.float32), (2, 0, 1)) if kx > 0
          else jnp.zeros((1, d_out, d_in), jnp.float32))   # (max(kx,1), d_out, d_in)

    # Batch blocking: largest divisor of bsz fitting a ~24 MiB working set,
    # preferring an even grid of >= 2 steps so both v7x TensorCores get work.
    def _blk_bytes(blk):
        return 4 * blk * T_pad * (2 * d_in + 2 * d_out + d_state)

    fits = [d for d in range(1, bsz + 1)
            if bsz % d == 0 and _blk_bytes(d) <= (24 << 20)] or [1]
    even = [d for d in fits if (bsz // d) >= 2 and (bsz // d) % 2 == 0]
    b_blk = max(even) if even else max(fits)
    grid = bsz // b_blk

    w_bytes = 4 * (d_state * d_in + d_out * d_state + max(kx, 1) * d_out * d_in
                   + d_state * (chunk + 1))
    vmem_limit = int(min(max(2 * (_blk_bytes(b_blk) + 2 * w_bytes) + (4 << 20),
                             32 << 20), 64 << 20))

    kernel = functools.partial(lds_kernel, chunk=chunk, kx=kx)

    out = pl.pallas_call(
        kernel,
        out_shape=jax.ShapeDtypeStruct((bsz, d_out, T_pad), jnp.float32),
        grid_spec=pltpu.PrefetchScalarGridSpec(
            num_scalar_prefetch=0,
            grid=(grid,),
            in_specs=[
                pl.BlockSpec((b_blk, d_in, T_pad), lambda b: (b, 0, 0)),       # x
                pl.BlockSpec((d_state, 1), lambda b: (0, 0)),                  # h0
                pl.BlockSpec((d_state, chunk), lambda b: (0, 0)),              # A powers
                pl.BlockSpec((d_state, d_in), lambda b: (0, 0)),               # B^T
                pl.BlockSpec((d_out, d_state), lambda b: (0, 0)),              # C^T
                pl.BlockSpec((max(kx, 1), d_out, d_in), lambda b: (0, 0, 0)),  # M_k stack
            ],
            out_specs=pl.BlockSpec((b_blk, d_out, T_pad), lambda b: (b, 0, 0)),
            scratch_shapes=[pltpu.VMEM((b_blk, d_state, T_pad), jnp.float32)],
        ),
        compiler_params=pltpu.CompilerParams(
            dimension_semantics=("parallel",),   # batch blocks are independent
            vmem_limit_bytes=vmem_limit),
    )(xt, h0c, Apow, Bt, Ct, Ms)

    # Back to batch-major (bsz, T, d_out); drop the time padding.
    return jnp.transpose(out, (0, 2, 1))[:, :T, :].astype(x.dtype)


def lds_reference(x, h0, A, B, C, M):
    """Pure-JAX reference matching the PyTorch forward."""
    bsz, T, _ = x.shape
    d_out = C.shape[1]
    kx = M.shape[2]
    h0b = jnp.broadcast_to(h0, (bsz, A.shape[0]))

    def step(h, u_t):
        h = A * h + u_t @ B
        return h, h

    _, hs = lax.scan(step, h0b, jnp.transpose(x, (1, 0, 2)))
    hs = jnp.transpose(hs, (1, 0, 2))              # (bsz, T, d_state)
    out = hs @ C
    ar = jnp.zeros((bsz, T, d_out), x.dtype)
    for k in range(kx):
        yk = x @ M[:, :, k].T                      # (bsz, T, d_out)
        ar = ar.at[:, k:, :].add(yk[:, : T - k, :])
    return out + ar


def exponential_decay_init(key, shape, lam=5.0):
    # Deterministic stand-in for the module's exponential_decay_init.
    return jnp.exp(-lam * jax.random.uniform(key, shape, dtype=jnp.float32))


if __name__ == "__main__":
    # Small shapes consistent with the module's forward; seq_len exercises the
    # time-padding path (20 -> 32) and grid=(2,) batch parallelism.
    bsz, seq_len = 2, 20
    state_dim, input_dim, output_dim, kx = 32, 4, 4, 4
    lam = 5.0

    key = jax.random.PRNGKey(0)
    kA, kB, kC, kM, kX, kH = jax.random.split(key, 6)

    h0 = 0.1 * jax.random.normal(kH, (state_dim,), jnp.float32)
    A = exponential_decay_init(kA, (state_dim,), lam=lam)
    B = jax.random.normal(kB, (input_dim, state_dim), jnp.float32) / input_dim
    C = jax.random.normal(kC, (state_dim, output_dim), jnp.float32) / state_dim
    M = jax.random.normal(kM, (output_dim, input_dim, kx), jnp.float32) / input_dim
    x = jax.random.normal(kX, (bsz, seq_len, input_dim), jnp.float32)

    out = jax.block_until_ready(lds_forward(x, h0, A, B, C, M))
    ref = jax.block_until_ready(lds_reference(x, h0, A, B, C, M))

    assert out.shape == (bsz, seq_len, output_dim), out.shape
    err = float(jnp.max(jnp.abs(out - ref)))
    assert jnp.allclose(out, ref, atol=2e-5, rtol=1e-5), err
    print("KERNEL_OK")
</pallas_src>

<mosaic_0001>
module attributes {stable_mosaic.version = 11 : i64} {
  func.func @lds_kernel(%arg0: i32, %arg1: memref<1x4x32xf32, #tpu.memory_space<vmem>>, %arg2: memref<32x1xf32, #tpu.memory_space<vmem>>, %arg3: memref<32x32xf32, #tpu.memory_space<vmem>>, %arg4: memref<32x4xf32, #tpu.memory_space<vmem>>, %arg5: memref<4x32xf32, #tpu.memory_space<vmem>>, %arg6: memref<4x4x4xf32, #tpu.memory_space<vmem>>, %arg7: memref<1x4x32xf32, #tpu.memory_space<vmem>>, %arg8: memref<1x32x32xf32, #tpu.memory_space<vmem>>) attributes {dimension_semantics = [#tpu.dimension_semantics<parallel>], iteration_bounds = array<i64: 2>, scalar_prefetch = 0 : i64, scratch_operands = 1 : i64, tpu.core_type = #tpu.core_type<tc>, window_params = [{transform_indices = @transform_0, window_bounds = array<i64: 1, 4, 32>}, {pipeline_mode = #tpu.pipeline_mode<synchronous>, transform_indices = @transform_1, window_bounds = array<i64: 32, 1>}, {pipeline_mode = #tpu.pipeline_mode<synchronous>, transform_indices = @transform_2, window_bounds = array<i64: 32, 32>}, {pipeline_mode = #tpu.pipeline_mode<synchronous>, transform_indices = @transform_3, window_bounds = array<i64: 32, 4>}, {pipeline_mode = #tpu.pipeline_mode<synchronous>, transform_indices = @transform_4, window_bounds = array<i64: 4, 32>}, {pipeline_mode = #tpu.pipeline_mode<synchronous>, transform_indices = @transform_5, window_bounds = array<i64: 4, 4, 4>}, {transform_indices = @transform_6, window_bounds = array<i64: 1, 4, 32>}]} {
    %c0 = arith.constant 0 : index
    %c0_0 = arith.constant 0 : index
    %c0_1 = arith.constant 0 : index
    %0 = vector.load %arg1[%c0, %c0_0, %c0_1] : memref<1x4x32xf32, #tpu.memory_space<vmem>>, vector<1x4x32xf32>
    %c0_2 = arith.constant 0 : index
    %c0_3 = arith.constant 0 : index
    %1 = vector.load %arg4[%c0_2, %c0_3] : memref<32x4xf32, #tpu.memory_space<vmem>>, vector<32x4xf32>
    %2 = vector.shape_cast %1 : vector<32x4xf32> to vector<1x32x4xf32>
    %cst = arith.constant dense<0.000000e+00> : vector<1x32x32xf32>
    %3 = tpu.matmul %2, %0, %cst {dimension_numbers = #tpu.dot_dimension_numbers<[2], [1], [1], [2], [0, 0, 0, 1, 1, 2], [0], [0]>} : vector<1x32x4xf32>, vector<1x4x32xf32>, vector<1x32x32xf32> -> vector<1x32x32xf32>
    %c0_4 = arith.constant 0 : index
    %c0_5 = arith.constant 0 : index
    %c0_6 = arith.constant 0 : index
    %4 = vector.load %arg8[%c0_4, %c0_5, %c0_6] : memref<1x32x32xf32, #tpu.memory_space<vmem>>, vector<1x32x32xf32>
    tpu.vector_store %arg8[%c0_4, %c0_5, %c0_6], %3 {strides = array<i32>} : memref<1x32x32xf32, #tpu.memory_space<vmem>>, vector<1x32x32xf32>,
    %c0_7 = arith.constant 0 : index
    %c0_8 = arith.constant 0 : index
    %5 = vector.load %arg3[%c0_7, %c0_8] : memref<32x32xf32, #tpu.memory_space<vmem>>, vector<32x32xf32>
    %6 = vector.shape_cast %5 : vector<32x32xf32> to vector<1x32x32xf32>
    %7 = vector.extract_strided_slice %5 {offsets = [0, 0], sizes = [32, 1], strides = [1, 1]} : vector<32x32xf32> to vector<32x1xf32>
    %8 = vector.shape_cast %7 : vector<32x1xf32> to vector<1x32x1xf32>
    %9 = vector.extract_strided_slice %5 {offsets = [0, 1], sizes = [32, 1], strides = [1, 1]} : vector<32x32xf32> to vector<32x1xf32>
    %10 = vector.shape_cast %9 : vector<32x1xf32> to vector<1x32x1xf32>
    %11 = vector.extract_strided_slice %5 {offsets = [0, 3], sizes = [32, 1], strides = [1, 1]} : vector<32x32xf32> to vector<32x1xf32>
    %12 = vector.shape_cast %11 : vector<32x1xf32> to vector<1x32x1xf32>
    %13 = vector.extract_strided_slice %5 {offsets = [0, 7], sizes = [32, 1], strides = [1, 1]} : vector<32x32xf32> to vector<32x1xf32>
    %14 = vector.shape_cast %13 : vector<32x1xf32> to vector<1x32x1xf32>
    %15 = vector.extract_strided_slice %5 {offsets = [0, 15], sizes = [32, 1], strides = [1, 1]} : vector<32x32xf32> to vector<32x1xf32>
    %16 = vector.shape_cast %15 : vector<32x1xf32> to vector<1x32x1xf32>
    %17 = tpu.iota {dimensions = array<i32: 2>} : vector<1x1x32xi32>
    %c0_9 = arith.constant 0 : index
    %c0_10 = arith.constant 0 : index
    %18 = vector.load %arg2[%c0_9, %c0_10] : memref<32x1xf32, #tpu.memory_space<vmem>>, vector<32x1xf32>
    %19 = vector.shape_cast %18 : vector<32x1xf32> to vector<1x32x1xf32>
    %c0_11 = arith.constant 0 : index
    %c0_12 = arith.constant 0 : index
    %c0_13 = arith.constant 0 : index
    %20 = vector.load %arg8[%c0_11, %c0_12, %c0_13] : memref<1x32x32xf32, #tpu.memory_space<vmem>>, vector<1x32x32xf32>
    %c1_i32 = arith.constant 1 : i32
    %21 = vector.broadcast %c1_i32 : i32 to vector<1x1x32xi32>
    %22 = arith.cmpi sge, %17, %21 : vector<1x1x32xi32>
    %23 = vector.shape_cast %20 : vector<1x32x32xf32> to vector<32x32xf32>
    %c1_i32_14 = arith.constant 1 : i32
    %24 = tpu.dynamic_rotate %23 by %c1_i32_14 dim 1 : vector<32x32xf32>, i32 -> vector<32x32xf32>
    %25 = vector.shape_cast %24 : vector<32x32xf32> to vector<1x32x32xf32>
    %26 = vector.broadcast %8 : vector<1x32x1xf32> to vector<1x32x32xf32>
    %27 = arith.mulf %26, %25 : vector<1x32x32xf32>
    %cst_15 = arith.constant 0.000000e+00 : f32
    %28 = vector.shape_cast %22 : vector<1x1x32xi1> to vector<1x1x32xi1>
    %29 = vector.broadcast %28 : vector<1x1x32xi1> to vector<1x32x32xi1>
    %30 = vector.broadcast %cst_15 : f32 to vector<1x32x32xf32>
    %31 = arith.select %29, %27, %30 : vector<1x32x32xi1>, vector<1x32x32xf32>
    %32 = arith.addf %20, %31 : vector<1x32x32xf32>
    %c2_i32 = arith.constant 2 : i32
    %33 = vector.broadcast %c2_i32 : i32 to vector<1x1x32xi32>
    %34 = arith.cmpi sge, %17, %33 : vector<1x1x32xi32>
    %35 = vector.shape_cast %32 : vector<1x32x32xf32> to vector<32x32xf32>
    %c2_i32_16 = arith.constant 2 : i32
    %36 = tpu.dynamic_rotate %35 by %c2_i32_16 dim 1 : vector<32x32xf32>, i32 -> vector<32x32xf32>
    %37 = vector.shape_cast %36 : vector<32x32xf32> to vector<1x32x32xf32>
    %38 = vector.broadcast %10 : vector<1x32x1xf32> to vector<1x32x32xf32>
    %39 = arith.mulf %38, %37 : vector<1x32x32xf32>
    %cst_17 = arith.constant 0.000000e+00 : f32
    %40 = vector.shape_cast %34 : vector<1x1x32xi1> to vector<1x1x32xi1>
    %41 = vector.broadcast %40 : vector<1x1x32xi1> to vector<1x32x32xi1>
    %42 = vector.broadcast %cst_17 : f32 to vector<1x32x32xf32>
    %43 = arith.select %41, %39, %42 : vector<1x32x32xi1>, vector<1x32x32xf32>
    %44 = arith.addf %32, %43 : vector<1x32x32xf32>
    %c4_i32 = arith.constant 4 : i32
    %45 = vector.broadcast %c4_i32 : i32 to vector<1x1x32xi32>
    %46 = arith.cmpi sge, %17, %45 : vector<1x1x32xi32>
    %47 = vector.shape_cast %44 : vector<1x32x32xf32> to vector<32x32xf32>
    %c4_i32_18 = arith.constant 4 : i32
    %48 = tpu.dynamic_rotate %47 by %c4_i32_18 dim 1 : vector<32x32xf32>, i32 -> vector<32x32xf32>
    %49 = vector.shape_cast %48 : vector<32x32xf32> to vector<1x32x32xf32>
    %50 = vector.broadcast %12 : vector<1x32x1xf32> to vector<1x32x32xf32>
    %51 = arith.mulf %50, %49 : vector<1x32x32xf32>
    %cst_19 = arith.constant 0.000000e+00 : f32
    %52 = vector.shape_cast %46 : vector<1x1x32xi1> to vector<1x1x32xi1>
    %53 = vector.broadcast %52 : vector<1x1x32xi1> to vector<1x32x32xi1>
    %54 = vector.broadcast %cst_19 : f32 to vector<1x32x32xf32>
    %55 = arith.select %53, %51, %54 : vector<1x32x32xi1>, vector<1x32x32xf32>
    %56 = arith.addf %44, %55 : vector<1x32x32xf32>
    %c8_i32 = arith.constant 8 : i32
    %57 = vector.broadcast %c8_i32 : i32 to vector<1x1x32xi32>
    %58 = arith.cmpi sge, %17, %57 : vector<1x1x32xi32>
    %59 = vector.shape_cast %56 : vector<1x32x32xf32> to vector<32x32xf32>
    %c8_i32_20 = arith.constant 8 : i32
    %60 = tpu.dynamic_rotate %59 by %c8_i32_20 dim 1 : vector<32x32xf32>, i32 -> vector<32x32xf32>
    %61 = vector.shape_cast %60 : vector<32x32xf32> to vector<1x32x32xf32>
    %62 = vector.broadcast %14 : vector<1x32x1xf32> to vector<1x32x32xf32>
    %63 = arith.mulf %62, %61 : vector<1x32x32xf32>
    %cst_21 = arith.constant 0.000000e+00 : f32
    %64 = vector.shape_cast %58 : vector<1x1x32xi1> to vector<1x1x32xi1>
    %65 = vector.broadcast %64 : vector<1x1x32xi1> to vector<1x32x32xi1>
    %66 = vector.broadcast %cst_21 : f32 to vector<1x32x32xf32>
    %67 = arith.select %65, %63, %66 : vector<1x32x32xi1>, vector<1x32x32xf32>
    %68 = arith.addf %56, %67 : vector<1x32x32xf32>
    %c16_i32 = arith.constant 16 : i32
    %69 = vector.broadcast %c16_i32 : i32 to vector<1x1x32xi32>
    %70 = arith.cmpi sge, %17, %69 : vector<1x1x32xi32>
    %71 = vector.shape_cast %68 : vector<1x32x32xf32> to vector<32x32xf32>
    %c16_i32_22 = arith.constant 16 : i32
    %72 = tpu.dynamic_rotate %71 by %c16_i32_22 dim 1 : vector<32x32xf32>, i32 -> vector<32x32xf32>
    %73 = vector.shape_cast %72 : vector<32x32xf32> to vector<1x32x32xf32>
    %74 = vector.broadcast %16 : vector<1x32x1xf32> to vector<1x32x32xf32>
    %75 = arith.mulf %74, %73 : vector<1x32x32xf32>
    %cst_23 = arith.constant 0.000000e+00 : f32
    %76 = vector.shape_cast %70 : vector<1x1x32xi1> to vector<1x1x32xi1>
    %77 = vector.broadcast %76 : vector<1x1x32xi1> to vector<1x32x32xi1>
    %78 = vector.broadcast %cst_23 : f32 to vector<1x32x32xf32>
    %79 = arith.select %77, %75, %78 : vector<1x32x32xi1>, vector<1x32x32xf32>
    %80 = arith.addf %68, %79 : vector<1x32x32xf32>
    %81 = vector.broadcast %19 : vector<1x32x1xf32> to vector<1x32x32xf32>
    %82 = arith.mulf %6, %81 : vector<1x32x32xf32>
    %83 = arith.addf %80, %82 : vector<1x32x32xf32>
    %c0_24 = arith.constant 0 : index
    %c0_25 = arith.constant 0 : index
    %c0_26 = arith.constant 0 : index
    %84 = vector.load %arg8[%c0_24, %c0_25, %c0_26] : memref<1x32x32xf32, #tpu.memory_space<vmem>>, vector<1x32x32xf32>
    tpu.vector_store %arg8[%c0_24, %c0_25, %c0_26], %83 {strides = array<i32>} : memref<1x32x32xf32, #tpu.memory_space<vmem>>, vector<1x32x32xf32>,
    %c0_27 = arith.constant 0 : index
    %c0_28 = arith.constant 0 : index
    %85 = vector.load %arg5[%c0_27, %c0_28] : memref<4x32xf32, #tpu.memory_space<vmem>>, vector<4x32xf32>
    %c0_29 = arith.constant 0 : index
    %c0_30 = arith.constant 0 : index
    %c0_31 = arith.constant 0 : index
    %86 = vector.load %arg8[%c0_29, %c0_30, %c0_31] : memref<1x32x32xf32, #tpu.memory_space<vmem>>, vector<1x32x32xf32>
    %87 = vector.shape_cast %85 : vector<4x32xf32> to vector<1x4x32xf32>
    %cst_32 = arith.constant dense<0.000000e+00> : vector<1x4x32xf32>
    %88 = tpu.matmul %87, %86, %cst_32 {dimension_numbers = #tpu.dot_dimension_numbers<[2], [1], [1], [2], [0, 0, 0, 1, 1, 2], [0], [0]>} : vector<1x4x32xf32>, vector<1x32x32xf32>, vector<1x4x32xf32> -> vector<1x4x32xf32>
    %89 = tpu.iota {dimensions = array<i32: 2>} : vector<1x1x32xi32>
    %c0_33 = arith.constant 0 : index
    %c0_34 = arith.constant 0 : index
    %c0_35 = arith.constant 0 : index
    %90 = vector.load %arg6[%c0_33, %c0_34, %c0_35] : memref<4x4x4xf32, #tpu.memory_space<vmem>>, vector<1x4x4xf32>
    %91 = vector.shape_cast %90 : vector<1x4x4xf32> to vector<4x4xf32>
    %92 = vector.shape_cast %91 : vector<4x4xf32> to vector<1x4x4xf32>
    %cst_36 = arith.constant dense<0.000000e+00> : vector<1x4x32xf32>
    %93 = tpu.matmul %92, %0, %cst_36 {dimension_numbers = #tpu.dot_dimension_numbers<[2], [1], [1], [2], [0, 0, 0, 1, 1, 2], [0], [0]>} : vector<1x4x4xf32>, vector<1x4x32xf32>, vector<1x4x32xf32> -> vector<1x4x32xf32>
    %94 = arith.addf %88, %93 : vector<1x4x32xf32>
    %c1_i32_37 = arith.constant 1 : i32
    %95 = vector.broadcast %c1_i32_37 : i32 to vector<1x1x32xi32>
    %96 = arith.cmpi sge, %89, %95 : vector<1x1x32xi32>
    %97 = vector.shape_cast %0 : vector<1x4x32xf32> to vector<4x32xf32>
    %c1_i32_38 = arith.constant 1 : i32
    %98 = tpu.dynamic_rotate %97 by %c1_i32_38 dim 1 : vector<4x32xf32>, i32 -> vector<4x32xf32>
    %99 = vector.shape_cast %98 : vector<4x32xf32> to vector<1x4x32xf32>
    %cst_39 = arith.constant 0.000000e+00 : f32
    %100 = vector.shape_cast %96 : vector<1x1x32xi1> to vector<1x1x32xi1>
    %101 = vector.broadcast %100 : vector<1x1x32xi1> to vector<1x4x32xi1>
    %102 = vector.broadcast %cst_39 : f32 to vector<1x4x32xf32>
    %103 = arith.select %101, %99, %102 : vector<1x4x32xi1>, vector<1x4x32xf32>
    %c1 = arith.constant 1 : index
    %c0_40 = arith.constant 0 : index
    %c0_41 = arith.constant 0 : index
    %104 = vector.load %arg6[%c1, %c0_40, %c0_41] : memref<4x4x4xf32, #tpu.memory_space<vmem>>, vector<1x4x4xf32>
    %105 = vector.shape_cast %104 : vector<1x4x4xf32> to vector<4x4xf32>
    %106 = vector.shape_cast %105 : vector<4x4xf32> to vector<1x4x4xf32>
    %cst_42 = arith.constant dense<0.000000e+00> : vector<1x4x32xf32>
    %107 = tpu.matmul %106, %103, %cst_42 {dimension_numbers = #tpu.dot_dimension_numbers<[2], [1], [1], [2], [0, 0, 0, 1, 1, 2], [0], [0]>} : vector<1x4x4xf32>, vector<1x4x32xf32>, vector<1x4x32xf32> -> vector<1x4x32xf32>
    %108 = arith.addf %94, %107 : vector<1x4x32xf32>
    %c2_i32_43 = arith.constant 2 : i32
    %109 = vector.broadcast %c2_i32_43 : i32 to vector<1x1x32xi32>
    %110 = arith.cmpi sge, %89, %109 : vector<1x1x32xi32>
    %111 = vector.shape_cast %0 : vector<1x4x32xf32> to vector<4x32xf32>
    %c2_i32_44 = arith.constant 2 : i32
    %112 = tpu.dynamic_rotate %111 by %c2_i32_44 dim 1 : vector<4x32xf32>, i32 -> vector<4x32xf32>
    %113 = vector.shape_cast %112 : vector<4x32xf32> to vector<1x4x32xf32>
    %cst_45 = arith.constant 0.000000e+00 : f32
    %114 = vector.shape_cast %110 : vector<1x1x32xi1> to vector<1x1x32xi1>
    %115 = vector.broadcast %114 : vector<1x1x32xi1> to vector<1x4x32xi1>
    %116 = vector.broadcast %cst_45 : f32 to vector<1x4x32xf32>
    %117 = arith.select %115, %113, %116 : vector<1x4x32xi1>, vector<1x4x32xf32>
    %c2 = arith.constant 2 : index
    %c0_46 = arith.constant 0 : index
    %c0_47 = arith.constant 0 : index
    %118 = vector.load %arg6[%c2, %c0_46, %c0_47] : memref<4x4x4xf32, #tpu.memory_space<vmem>>, vector<1x4x4xf32>
    %119 = vector.shape_cast %118 : vector<1x4x4xf32> to vector<4x4xf32>
    %120 = vector.shape_cast %119 : vector<4x4xf32> to vector<1x4x4xf32>
    %cst_48 = arith.constant dense<0.000000e+00> : vector<1x4x32xf32>
    %121 = tpu.matmul %120, %117, %cst_48 {dimension_numbers = #tpu.dot_dimension_numbers<[2], [1], [1], [2], [0, 0, 0, 1, 1, 2], [0], [0]>} : vector<1x4x4xf32>, vector<1x4x32xf32>, vector<1x4x32xf32> -> vector<1x4x32xf32>
    %122 = arith.addf %108, %121 : vector<1x4x32xf32>
    %c3_i32 = arith.constant 3 : i32
    %123 = vector.broadcast %c3_i32 : i32 to vector<1x1x32xi32>
    %124 = arith.cmpi sge, %89, %123 : vector<1x1x32xi32>
    %125 = vector.shape_cast %0 : vector<1x4x32xf32> to vector<4x32xf32>
    %c3_i32_49 = arith.constant 3 : i32
    %126 = tpu.dynamic_rotate %125 by %c3_i32_49 dim 1 : vector<4x32xf32>, i32 -> vector<4x32xf32>
    %127 = vector.shape_cast %126 : vector<4x32xf32> to vector<1x4x32xf32>
    %cst_50 = arith.constant 0.000000e+00 : f32
    %128 = vector.shape_cast %124 : vector<1x1x32xi1> to vector<1x1x32xi1>
    %129 = vector.broadcast %128 : vector<1x1x32xi1> to vector<1x4x32xi1>
    %130 = vector.broadcast %cst_50 : f32 to vector<1x4x32xf32>
    %131 = arith.select %129, %127, %130 : vector<1x4x32xi1>, vector<1x4x32xf32>
    %c3 = arith.constant 3 : index
    %c0_51 = arith.constant 0 : index
    %c0_52 = arith.constant 0 : index
    %132 = vector.load %arg6[%c3, %c0_51, %c0_52] : memref<4x4x4xf32, #tpu.memory_space<vmem>>, vector<1x4x4xf32>
    %133 = vector.shape_cast %132 : vector<1x4x4xf32> to vector<4x4xf32>
    %134 = vector.shape_cast %133 : vector<4x4xf32> to vector<1x4x4xf32>
    %cst_53 = arith.constant dense<0.000000e+00> : vector<1x4x32xf32>
    %135 = tpu.matmul %134, %131, %cst_53 {dimension_numbers = #tpu.dot_dimension_numbers<[2], [1], [1], [2], [0, 0, 0, 1, 1, 2], [0], [0]>} : vector<1x4x4xf32>, vector<1x4x32xf32>, vector<1x4x32xf32> -> vector<1x4x32xf32>
    %136 = arith.addf %122, %135 : vector<1x4x32xf32>
    %c0_54 = arith.constant 0 : index
    %c0_55 = arith.constant 0 : index
    %c0_56 = arith.constant 0 : index
    %137 = vector.load %arg7[%c0_54, %c0_55, %c0_56] : memref<1x4x32xf32, #tpu.memory_space<vmem>>, vector<1x4x32xf32>
    tpu.vector_store %arg7[%c0_54, %c0_55, %c0_56], %136 {strides = array<i32>} : memref<1x4x32xf32, #tpu.memory_space<vmem>>, vector<1x4x32xf32>,
    return
  }
  func.func @transform_0(%arg0: i32) -> (i32, i32, i32) {
    %c0_i32 = arith.constant 0 : i32
    %c0_i32_0 = arith.constant 0 : i32
    %c0_i32_1 = arith.constant 0 : i32
    return %arg0, %c0_i32, %c0_i32_0 : i32, i32, i32
  }
  func.func @transform_1(%arg0: i32) -> (i32, i32) {
    %c0_i32 = arith.constant 0 : i32
    %c0_i32_0 = arith.constant 0 : i32
    %c0_i32_1 = arith.constant 0 : i32
    return %c0_i32, %c0_i32_0 : i32, i32
  }
  func.func @transform_2(%arg0: i32) -> (i32, i32) {
    %c0_i32 = arith.constant 0 : i32
    %c0_i32_0 = arith.constant 0 : i32
    %c0_i32_1 = arith.constant 0 : i32
    return %c0_i32, %c0_i32_0 : i32, i32
  }
  func.func @transform_3(%arg0: i32) -> (i32, i32) {
    %c0_i32 = arith.constant 0 : i32
    %c0_i32_0 = arith.constant 0 : i32
    %c0_i32_1 = arith.constant 0 : i32
    return %c0_i32, %c0_i32_0 : i32, i32
  }
  func.func @transform_4(%arg0: i32) -> (i32, i32) {
    %c0_i32 = arith.constant 0 : i32
    %c0_i32_0 = arith.constant 0 : i32
    %c0_i32_1 = arith.constant 0 : i32
    return %c0_i32, %c0_i32_0 : i32, i32
  }
  func.func @transform_5(%arg0: i32) -> (i32, i32, i32) {
    %c0_i32 = arith.constant 0 : i32
    %c0_i32_0 = arith.constant 0 : i32
    %c0_i32_1 = arith.constant 0 : i32
    %c0_i32_2 = arith.constant 0 : i32
    return %c0_i32, %c0_i32_0, %c0_i32_1 : i32, i32, i32
  }
  func.func @transform_6(%arg0: i32) -> (i32, i32, i32) {
    %c0_i32 = arith.constant 0 : i32
    %c0_i32_0 = arith.constant 0 : i32
    %c0_i32_1 = arith.constant 0 : i32
    return %arg0, %c0_i32, %c0_i32_0 : i32, i32, i32
  }
}

</mosaic_0001>

<bundles_post_ra>
// kernel: tpu_custom_call.1
= control target key start
LH: loop header
LB: loop body
LE: loop exit
PB: predicated region body
PF: predicated region fallthrough
CT: control target
= control target key end

     0   :  { %11 = vsyncpa [#allocation4], 0  ;;  %s1922_s0 = inlined_call_operand.vmem [shape: f32[2,4,32], index: 0, kind: input, shape index: {}]   ;;  %s1923_s1 = inlined_call_operand.vmem [shape: f32[32,1], index: 1, kind: input, shape index: {}]   ;;  %s1924_s2 = inlined_call_operand.vmem [shape: f32[32,32], index: 2, kind: input, shape index: {}]   ;;  %s1925_s3 = inlined_call_operand.vmem [shape: f32[32,4], index: 3, kind: input, shape index: {}]   ;;  %s1926_s4 = inlined_call_operand.vmem [shape: f32[4,32], index: 4, kind: input, shape index: {}]   ;;  %s1927_s5 = inlined_call_operand.vmem [shape: f32[4,4,4], index: 5, kind: input, shape index: {}]   ;;  %s1928_s6 = inlined_call_operand.hbm [shape: f32[2,4,32], index: 6, kind: output, shape index: {}]  }
   0x1   :  { %13 = vsyncpa [#allocation4 + $0x1], 0  ;;  %s1528_s21 = smov 0   ;;  %s1530_s22 = smov 0  }
   0x2   :  { %s1532_s23 = smov 0   ;;  %s1534_s24 = smov 0  }
   0x3 LB: > { %s1549_s25 = sadd.s32 4294967295, %s1475_s24   ;;  %s1251_s26 = sadd.s32 4294967294, %s1475_s24   ;;  %s1475_s24 = sphi %s1534_s24, %s1934_s24   ;;  %s1471_s23 = sphi %s1532_s23, %s1933_s23   ;;  %s1467_s22 = sphi %s1530_s22, %s1932_s22   ;;  %s1463_s21 = sphi %s1528_s21, %s1931_s21  }
   0x4   : > { %s1553_s27 = sadd.s32 1, %s1475_s24   ;;  %s157_s28 = sadd.s32 1, %s1471_s23 }
   0x5   : > { %s154_s29 = ssub.s32 %s1475_s24, %s1553_s27  ;;  %p167_p0 = scmp.ne.s32.totalorder %s1471_s23, %s1467_s22 }
   0x6   : > { %p155_p1 = scmp.eq.s32.totalorder %s154_s29, 0  ;;  %p168_p2 = scmp.eq.s32.totalorder %s1549_s25, 1 }
   0x7   : > { %p173_p3 = scmp.ne.s32.totalorder %s1467_s22, %s1463_s21  ;;  %p174_p4 = scmp.eq.s32.totalorder %s1251_s26, 1 }
   0x8   : > { %s1564_s30 = scalar_select %p155_p1, %s1471_s23, %s157_s28  }
   0x9   : > { %p1566_p5 = por %p168_p2, %p167_p0  ;;  %p1570_p6 = por %p174_p4, %p173_p3 }
   0xa   : > { %p1254_p7 = scmp.ge.s32.totalorder %s1475_s24, 1  ;;  %p214_p8 = scmp.lt.s32.totalorder %s1475_s24, 3 }
   0xc   : > { %p215_p9 = pnand %p1254_p7, %p214_p8 }
   0xd   : > { %p243_p10 = scmp.lt.s32.totalorder (!%p215_p9), %s1549_s25, 1  ;;  %v248_v0 = vld [vmem:[%s1925_s3] sm:$0xff] (!%p215_p9)  ;;  %vm252_vm0 = vcmask (!%p215_p9), 31744   ;;  %vm265_vm1 = vcmask (!%p215_p9), 1043456   ;;  %v249_v2 = vld [vmem:[%s1925_s3 + $0x8] sm:$0xff] (!%p215_p9)  ;;  %v250_v3 = vld [vmem:[%s1925_s3 + $0x10] sm:$0xff] (!%p215_p9)  ;;  %v363_v43 = vlaneseq (!%p215_p9) }
   0xe   : > { %218 = sbr.rel (%p215_p9) target bundleno = 2262 (0x8d6), region = 44  ;;  %1298 = vmatprep.mubr.msk.f32.mxu0 (!%p215_p9), %vm252_vm0, %v248_v0  ;;  %v251_v4 = vld [vmem:[%s1925_s3 + $0x18] sm:$0xff] (!%p215_p9)  ;;  %v1477_v5 = vmov (!%p215_p9), 0   ;;  %vm354_vm2 = vcmask (!%p215_p9), 261120   ;;  %s1478_s28 = smov (!%p215_p9), 32   ;;  %v1615_v13 = vld [vmem:[%s1924_s2] sm:$0xff] (!%p215_p9) }
   0xf   : > { %1402 = vset.pattern.permute.xlu1 (!%p215_p9), %v1477_v5  ;;  %1401 = vset.pattern.permute.xlu0 (!%p215_p9), %v1477_v5  ;;  %v1625_v15 = vld [vmem:[%s1924_s2 + $0x8] sm:$0xff] (!%p215_p9)  ;;  %v1630_v16 = vld [vmem:[%s1924_s2 + $0x18] sm:$0xff] (!%p215_p9)  ;;  %v1637_v17 = vld [vmem:[%s1924_s2 + $0x10] sm:$0xff] (!%p215_p9)  ;;  %vm374_vm3 = vcmask (!%p215_p9), 1047808   ;;  %v1479_v33 = vmov (!%p215_p9), 1   ;;  %s1480_s16 = smov (!%p215_p9), 97  }
  0x10   : > { %v1658_v44 = vand.u32 (!%p215_p9), 127, %v363_v43  ;;  %s1482_s17 = smov (!%p215_p9), 98   ;;  %s1484_s18 = smov (!%p215_p9), 100   ;;  %vm1488_vm8 = vmmov (!%p215_p9), 0   ;;  %vm1176_vm11 = vcmask (!%p215_p9), 257024  }
  0x11   : > { %s1486_s19 = smov (!%p215_p9), 104   ;;  %s1275_s13 = sshll.u32 (!%p215_p9), %s1549_s25, 6 }
  0x12   : > { %vm373_vm4 = vcmp.ge.s32.totalorder (!%p215_p9), %v1658_v44, 1  ;;  %vm449_vm5 = vcmp.ge.s32.totalorder (!%p215_p9), %v1658_v44, 2  ;;  %vm520_vm6 = vcmp.ge.s32.totalorder (!%p215_p9), %v1658_v44, 4  ;;  %vm591_vm7 = vcmp.ge.s32.totalorder (!%p215_p9), %v1658_v44, 8 }
  0x13   : > { %vm662_vm9 = vcmp.ge.s32.totalorder (!%p215_p9), %v1658_v44, 16  ;;  %vm1090_vm10 = vcmp.ge.s32.totalorder (!%p215_p9), %v1658_v44, 3 }
  0x15   : > { %s244_s11 = scalar_select %p243_p10, %s1549_s25, 1 }
  0x17   : > { %s1256_s12 = sshll.u32 %s244_s11, 2  ;;  %s240_s11 = sand.u32 1, %s1467_s22  }
  0x18   : > { %s246_s15 = scalar_lea.vmem %s1922_s0, %s1256_s12  ;;  %s1255_s12 = sshll.u32 %s240_s11, 2 }
  0x19   : > { %v1585_v1 = vld [vmem:[%s246_s15] sm:$0xf]  ;;  %s1489_s15 = smov 112  }
  0x1a   : > { %1296 = vmatprep.subr.msk.mxu0 %vm265_vm1, %v1585_v1 }
  0x1b   : > { %1297 = vmatpush3.msk.msra.mxu0 %vm265_vm1, %v1585_v1 }
  0x1c   : > { %1299 = vmatmul.mubr.msk.f32.vlgmr.msra.gmra.mrb[0].mxu0 %vm252_vm0, %v249_v2 }
  0x1d   : > { %1301 = vmatprep.mubr.msk.f32.mxu0 %vm252_vm0, %v250_v3 }
  0x20   : > { %1302 = vmatmul.mubr.msk.f32.gmra.mrb[2].mxu0 %vm252_vm0, %v251_v4 }
  0xef   : > { %v1300_v6 = vpop.f32.mrb[0].mxu0 }
  0xf0   : > { %356 = vst.msk [vmem:[#allocation2 + $0x8] sm:$0xff] %vm354_vm2, %v1300_v6  ;;  %v335_v7 = vpop.f32.mrb[1].mxu0 }
  0xf1   : > { %355 = vst.msk [vmem:[#allocation2] sm:$0xff] %vm354_vm2, %v335_v7 }
  0xf3   : > { %v1303_v8 = vpop.f32.mrb[2].mxu0 }
  0xf4   : > { %358 = vst.msk [vmem:[#allocation2 + $0x18] sm:$0xff] %vm354_vm2, %v1303_v8  ;;  %v345_v9 = vpop.f32.mrb[3].mxu0 }
  0xf5   : > { %357 = vst.msk [vmem:[#allocation2 + $0x10] sm:$0xff] %vm354_vm2, %v345_v9 }
  0xf7   : > { %v370_v11 = vld [vmem:[#allocation2 + $0x8] sm:$0xff] }
  0xf8   : > { %v369_v10 = vld [vmem:[#allocation2] sm:$0xff] }
  0xf9   : > { %375 = vrot.lane.b32.xlu0 %v369_v10, %s1478_s28 }
  0xfb   : > { %v1617_v14 = vld [vmem:[#allocation2 + $0x18] sm:$0xff] }
  0xfc   : > { %v371_v12 = vld [vmem:[#allocation2 + $0x10] sm:$0xff] }
  0xfd   : > { %378 = vrot.lane.b32.xlu0 %v370_v11, %s1478_s28  ;;  %381 = vrot.lane.b32.xlu1 %v371_v12, %s1478_s28 }
 0x101   : > { %384 = vrot.lane.b32.xlu1 %v1617_v14, %s1478_s28  ;;  %401 = vperm.xlu0 %1401, %v1615_v13  }
 0x105   : > { %406 = vperm.xlu1 %1402, %v1625_v15   ;;  %416 = vperm.xlu0 %1401, %v1630_v16  }
 0x109   : > { %411 = vperm.xlu1 %1402, %v1637_v17   ;;  %1404 = vset.pattern.permute.xlu0 %v1479_v33 }
 0x10d   : > { %1403 = vset.pattern.permute.xlu1 %v1479_v33 }
 0x16b   : > { %v376_v18 = vpop.permute.xlu0 %375 }
 0x16c   : > { %v377_v19 = vsel %vm374_vm3, %v376_v18, %v369_v10 }
 0x16d   : > { %387 = vrot.lane.b32.xlu1 %v377_v19, %s1478_s28 }
 0x16f   : > { %v379_v20 = vpop.permute.xlu0 %378  ;;  %v382_v21 = vpop.permute.xlu1 %381 }
 0x170   : > { %v380_v22 = vsel %vm374_vm3, %v379_v20, %v370_v11  ;;  %v383_v23 = vsel %vm374_vm3, %v382_v21, %v371_v12 }
 0x171   : > { %389 = vrot.lane.b32.xlu0 %v380_v22, %s1478_s28  ;;  %391 = vrot.lane.b32.xlu1 %v383_v23, %s1478_s28 }
 0x173   : > { %v385_v24 = vpop.permute.xlu1 %384 }
 0x174   : > { %v386_v25 = vsel %vm374_vm3, %v385_v24, %v1617_v14 }
 0x175   : > { %393 = vrot.lane.b32.xlu0 %v386_v25, %s1478_s28 }
 0x180   : > { %v402_v27 = vpop.permute.xlu0 %401 }
 0x184   : > { %v407_v26 = vpop.permute.xlu1 %406  ;;  %v417_v29 = vpop.permute.xlu0 %416 }
 0x188   : > { %v412_v28 = vpop.permute.xlu1 %411 }
 0x1df   : > { %v388_v30 = vpop.permute.xlu1 %387 }
 0x1e0   : > { %v395_v31 = vsel %vm374_vm3, %v388_v30, %v369_v10 }
 0x1e1   : > { %v419_v32 = vmul.f32 %v402_v27, %v395_v31 }
 0x1e3   : > { %v390_v34 = vpop.permute.xlu0 %389  ;;  %429 = vrot.lane.b32.xlu1 %v419_v32, %s1480_s16  ;;  %v392_v35 = vpop.permute.xlu1 %391 }
 0x1e4   : > { %v396_v36 = vsel %vm374_vm3, %v390_v34, %v370_v11  ;;  %v397_v37 = vsel %vm374_vm3, %v392_v35, %v371_v12 }
 0x1e5   : > { %v420_v38 = vmul.f32 %v407_v26, %v396_v36  ;;  %v421_v39 = vmul.f32 %v412_v28, %v397_v37 }
 0x1e7   : > { %v394_v40 = vpop.permute.xlu0 %393  ;;  %431 = vrot.lane.b32.xlu0 %v420_v38, %s1480_s16  ;;  %433 = vrot.lane.b32.xlu1 %v421_v39, %s1480_s16 }
 0x1e8   : > { %v398_v41 = vsel %vm374_vm3, %v394_v40, %v1617_v14 }
 0x1e9   : > { %v422_v42 = vmul.f32 %v417_v29, %v398_v41 }
 0x1eb   : > { %435 = vrot.lane.b32.xlu0 %v422_v42, %s1480_s16 }
 0x255   : > { %v430_v45 = vpop.permute.xlu1 %429 }
 0x256   : > { %v441_v46 = vsel %vm373_vm4, %v430_v45, 0.0 }
 0x257   : > { %v445_v47 = vadd.f32 %v441_v46, %v369_v10  ;;  %v1481_v10 = vmov 3  }
 0x259   : > { %v432_v48 = vpop.permute.xlu0 %431  ;;  %450 = vrot.lane.b32.xlu1 %v445_v47, %s1478_s28  ;;  %v434_v49 = vpop.permute.xlu1 %433 }
 0x25a   : > { %v442_v50 = vsel %vm373_vm4, %v432_v48, 0.0  ;;  %v443_v51 = vsel %vm373_vm4, %v434_v49, 0.0 }
 0x25b   : > { %v446_v52 = vadd.f32 %v442_v50, %v370_v11  ;;  %v447_v53 = vadd.f32 %v443_v51, %v371_v12 }
 0x25d   : > { %453 = vrot.lane.b32.xlu0 %v446_v52, %s1478_s28  ;;  %v436_v54 = vpop.permute.xlu0 %435  ;;  %456 = vrot.lane.b32.xlu1 %v447_v53, %s1478_s28 }
 0x25e   : > { %v444_v55 = vsel %vm373_vm4, %v436_v54, 0.0 }
 0x25f   : > { %v448_v56 = vadd.f32 %v444_v55, %v1617_v14 }
 0x261   : > { %459 = vrot.lane.b32.xlu0 %v448_v56, %s1478_s28  ;;  %475 = vperm.xlu1 %1403, %v1615_v13  }
 0x265   : > { %483 = vperm.xlu1 %1403, %v1637_v17   ;;  %479 = vperm.xlu0 %1404, %v1625_v15  }
 0x269   : > { %487 = vperm.xlu1 %1403, %v1630_v16   ;;  %1405 = vset.pattern.permute.xlu0 %v1481_v10 }
 0x26d   : > { %1406 = vset.pattern.permute.xlu1 %v1481_v10 }
 0x2cb   : > { %v451_v57 = vpop.permute.xlu1 %450 }
 0x2cc   : > { %v452_v58 = vsel %vm374_vm3, %v451_v57, %v445_v47 }
 0x2cd   : > { %462 = vrot.lane.b32.xlu0 %v452_v58, %s1478_s28 }
 0x2cf   : > { %v454_v59 = vpop.permute.xlu0 %453  ;;  %v457_v60 = vpop.permute.xlu1 %456 }
 0x2d0   : > { %v455_v61 = vsel %vm374_vm3, %v454_v59, %v446_v52  ;;  %v458_v62 = vsel %vm374_vm3, %v457_v60, %v447_v53 }
 0x2d1   : > { %464 = vrot.lane.b32.xlu1 %v455_v61, %s1478_s28  ;;  %466 = vrot.lane.b32.xlu0 %v458_v62, %s1478_s28 }
 0x2d3   : > { %v460_v63 = vpop.permute.xlu0 %459 }
 0x2d4   : > { %v461_v0 = vsel %vm374_vm3, %v460_v63, %v448_v56 }
 0x2d5   : > { %468 = vrot.lane.b32.xlu1 %v461_v0, %s1478_s28 }
 0x2e0   : > { %v476_v2 = vpop.permute.xlu1 %475 }
 0x2e4   : > { %v484_v3 = vpop.permute.xlu1 %483  ;;  %v480_v4 = vpop.permute.xlu0 %479 }
 0x2e8   : > { %v488_v6 = vpop.permute.xlu1 %487 }
 0x33f   : > { %v463_v7 = vpop.permute.xlu0 %462 }
 0x340   : > { %v470_v8 = vsel %vm374_vm3, %v463_v7, %v445_v47 }
 0x341   : > { %v490_v9 = vmul.f32 %v476_v2, %v470_v8 }
 0x343   : > { %v467_v11 = vpop.permute.xlu0 %466  ;;  %500 = vrot.lane.b32.xlu0 %v490_v9, %s1482_s17  ;;  %v465_v12 = vpop.permute.xlu1 %464 }
 0x344   : > { %v472_v14 = vsel %vm374_vm3, %v467_v11, %v447_v53  ;;  %v471_v18 = vsel %vm374_vm3, %v465_v12, %v446_v52 }
 0x345   : > { %v492_v19 = vmul.f32 %v484_v3, %v472_v14  ;;  %v491_v20 = vmul.f32 %v480_v4, %v471_v18 }
 0x347   : > { %504 = vrot.lane.b32.xlu0 %v492_v19, %s1482_s17  ;;  %502 = vrot.lane.b32.xlu1 %v491_v20, %s1482_s17  ;;  %v469_v21 = vpop.permute.xlu1 %468 }
 0x348   : > { %v473_v22 = vsel %vm374_vm3, %v469_v21, %v448_v56 }
 0x349   : > { %v493_v23 = vmul.f32 %v488_v6, %v473_v22 }
 0x34b   : > { %506 = vrot.lane.b32.xlu1 %v493_v23, %s1482_s17 }
 0x3b5   : > { %v501_v24 = vpop.permute.xlu0 %500 }
 0x3b6   : > { %v512_v25 = vsel %vm449_vm5, %v501_v24, 0.0 }
 0x3b7   : > { %v516_v26 = vadd.f32 %v512_v25, %v445_v47 }
 0x3b9   : > { %521 = vrot.lane.b32.xlu0 %v516_v26, %s1478_s28  ;;  %v505_v27 = vpop.permute.xlu0 %504  ;;  %v503_v28 = vpop.permute.xlu1 %502 }
 0x3ba   : > { %v514_v29 = vsel %vm449_vm5, %v505_v27, 0.0  ;;  %v513_v30 = vsel %vm449_vm5, %v503_v28, 0.0 }
 0x3bb   : > { %v518_v31 = vadd.f32 %v514_v29, %v447_v53  ;;  %v517_v32 = vadd.f32 %v513_v30, %v446_v52  ;;  %v1483_v52 = vmov 7  }
 0x3bd   : > { %527 = vrot.lane.b32.xlu0 %v518_v31, %s1478_s28  ;;  %524 = vrot.lane.b32.xlu1 %v517_v32, %s1478_s28  ;;  %v507_v33 = vpop.permute.xlu1 %506 }
 0x3be   : > { %v515_v34 = vsel %vm449_vm5, %v507_v33, 0.0 }
 0x3bf   : > { %v519_v35 = vadd.f32 %v515_v34, %v448_v56 }
 0x3c1   : > { %530 = vrot.lane.b32.xlu1 %v519_v35, %s1478_s28  ;;  %546 = vperm.xlu0 %1405, %v1615_v13  }
 0x3c5   : > { %550 = vperm.xlu1 %1406, %v1625_v15   ;;  %558 = vperm.xlu0 %1405, %v1630_v16  }
 0x3c9   : > { %554 = vperm.xlu1 %1406, %v1637_v17   ;;  %1408 = vset.pattern.permute.xlu0 %v1483_v52 }
 0x3cd   : > { %1407 = vset.pattern.permute.xlu1 %v1483_v52 }
 0x42b   : > { %v522_v36 = vpop.permute.xlu0 %521 }
 0x42c   : > { %v523_v37 = vsel %vm374_vm3, %v522_v36, %v516_v26 }
 0x42d   : > { %533 = vrot.lane.b32.xlu1 %v523_v37, %s1478_s28 }
 0x42f   : > { %v528_v38 = vpop.permute.xlu0 %527  ;;  %v525_v39 = vpop.permute.xlu1 %524 }
 0x430   : > { %v529_v40 = vsel %vm374_vm3, %v528_v38, %v518_v31  ;;  %v526_v41 = vsel %vm374_vm3, %v525_v39, %v517_v32 }
 0x431   : > { %537 = vrot.lane.b32.xlu1 %v529_v40, %s1478_s28  ;;  %535 = vrot.lane.b32.xlu0 %v526_v41, %s1478_s28 }
 0x433   : > { %v531_v42 = vpop.permute.xlu1 %530 }
 0x434   : > { %v532_v43 = vsel %vm374_vm3, %v531_v42, %v519_v35 }
 0x435   : > { %539 = vrot.lane.b32.xlu0 %v532_v43, %s1478_s28 }
 0x440   : > { %v547_v46 = vpop.permute.xlu0 %546 }
 0x444   : > { %v551_v45 = vpop.permute.xlu1 %550  ;;  %v559_v48 = vpop.permute.xlu0 %558 }
 0x448   : > { %v555_v47 = vpop.permute.xlu1 %554 }
 0x49f   : > { %v534_v49 = vpop.permute.xlu1 %533 }
 0x4a0   : > { %v541_v50 = vsel %vm374_vm3, %v534_v49, %v516_v26 }
 0x4a1   : > { %v561_v51 = vmul.f32 %v547_v46, %v541_v50 }
 0x4a3   : > { %v536_v53 = vpop.permute.xlu0 %535  ;;  %571 = vrot.lane.b32.xlu1 %v561_v51, %s1484_s18  ;;  %v538_v54 = vpop.permute.xlu1 %537 }
 0x4a4   : > { %v542_v55 = vsel %vm374_vm3, %v536_v53, %v517_v32  ;;  %v543_v56 = vsel %vm374_vm3, %v538_v54, %v518_v31 }
 0x4a5   : > { %v562_v57 = vmul.f32 %v551_v45, %v542_v55  ;;  %v563_v58 = vmul.f32 %v555_v47, %v543_v56 }
 0x4a7   : > { %v540_v59 = vpop.permute.xlu0 %539  ;;  %573 = vrot.lane.b32.xlu0 %v562_v57, %s1484_s18  ;;  %575 = vrot.lane.b32.xlu1 %v563_v58, %s1484_s18 }
 0x4a8   : > { %v544_v60 = vsel %vm374_vm3, %v540_v59, %v519_v35 }
 0x4a9   : > { %v564_v61 = vmul.f32 %v559_v48, %v544_v60 }
 0x4ab   : > { %577 = vrot.lane.b32.xlu0 %v564_v61, %s1484_s18  ;;  %s1491_s18 = smov 99  }
 0x515   : > { %v572_v62 = vpop.permute.xlu1 %571 }
 0x516   : > { %v583_v63 = vsel %vm520_vm6, %v572_v62, 0.0 }
 0x517   : > { %v587_v0 = vadd.f32 %v583_v63, %v516_v26  ;;  %v365_v63 = vld [vmem:[%s1923_s1] sm:$0xff] }
 0x519   : > { %v574_v2 = vpop.permute.xlu0 %573  ;;  %592 = vrot.lane.b32.xlu1 %v587_v0, %s1478_s28  ;;  %v576_v3 = vpop.permute.xlu1 %575 }
 0x51a   : > { %v584_v4 = vsel %vm520_vm6, %v574_v2, 0.0  ;;  %v585_v6 = vsel %vm520_vm6, %v576_v3, 0.0  ;;  %v367_v2 = vld [vmem:[%s1923_s1 + $0x10] sm:$0xff]  ;;  %v368_v3 = vld [vmem:[%s1923_s1 + $0x18] sm:$0xff] }
 0x51b   : > { %v588_v7 = vadd.f32 %v584_v4, %v517_v32  ;;  %v589_v8 = vadd.f32 %v585_v6, %v518_v31  ;;  %v1485_v31 = vmov 15  }
 0x51d   : > { %595 = vrot.lane.b32.xlu0 %v588_v7, %s1478_s28  ;;  %v578_v9 = vpop.permute.xlu0 %577  ;;  %598 = vrot.lane.b32.xlu1 %v589_v8, %s1478_s28 }
 0x51e   : > { %v586_v10 = vsel %vm520_vm6, %v578_v9, 0.0  ;;  %v770_v9 = vld [vmem:[%s1927_s5] sm:$0xf] }
 0x51f   : > { %v590_v11 = vadd.f32 %v586_v10, %v519_v35 }
 0x521   : > { %601 = vrot.lane.b32.xlu0 %v590_v11, %s1478_s28  ;;  %617 = vperm.xlu1 %1407, %v1615_v13  }
 0x525   : > { %625 = vperm.xlu1 %1407, %v1637_v17   ;;  %621 = vperm.xlu0 %1408, %v1625_v15  }
 0x529   : > { %629 = vperm.xlu1 %1407, %v1630_v16   ;;  %1410 = vset.pattern.permute.xlu0 %v1485_v31 }
 0x52d   : > { %1409 = vset.pattern.permute.xlu1 %v1485_v31 }
 0x58b   : > { %v593_v12 = vpop.permute.xlu1 %592 }
 0x58c   : > { %v594_v14 = vsel %vm374_vm3, %v593_v12, %v587_v0 }
 0x58d   : > { %604 = vrot.lane.b32.xlu0 %v594_v14, %s1478_s28 }
 0x58f   : > { %v596_v18 = vpop.permute.xlu0 %595  ;;  %v599_v19 = vpop.permute.xlu1 %598 }
 0x590   : > { %v597_v20 = vsel %vm374_vm3, %v596_v18, %v588_v7  ;;  %v600_v21 = vsel %vm374_vm3, %v599_v19, %v589_v8 }
 0x591   : > { %606 = vrot.lane.b32.xlu1 %v597_v20, %s1478_s28  ;;  %608 = vrot.lane.b32.xlu0 %v600_v21, %s1478_s28 }
 0x593   : > { %v602_v22 = vpop.permute.xlu0 %601 }
 0x594   : > { %v603_v23 = vsel %vm374_vm3, %v602_v22, %v590_v11 }
 0x595   : > { %610 = vrot.lane.b32.xlu1 %v603_v23, %s1478_s28 }
 0x5a0   : > { %v618_v24 = vpop.permute.xlu1 %617 }
 0x5a4   : > { %v626_v25 = vpop.permute.xlu1 %625  ;;  %v622_v26 = vpop.permute.xlu0 %621 }
 0x5a8   : > { %v630_v27 = vpop.permute.xlu1 %629 }
 0x5ff   : > { %v605_v28 = vpop.permute.xlu0 %604 }
 0x600   : > { %v612_v29 = vsel %vm374_vm3, %v605_v28, %v587_v0 }
 0x601   : > { %v632_v30 = vmul.f32 %v618_v24, %v612_v29  ;;  %v1490_v24 = vmov 0.0|0.0  }
 0x602   : > { %1335 = vmatprep.subr.bf16.mxu0 %v1490_v24 }
 0x603   : > { %v609_v32 = vpop.permute.xlu0 %608  ;;  %642 = vrot.lane.b32.xlu0 %v632_v30, %s1486_s19  ;;  %v607_v33 = vpop.permute.xlu1 %606 }
 0x604   : > { %v614_v34 = vsel %vm374_vm3, %v609_v32, %v589_v8  ;;  %v613_v35 = vsel %vm374_vm3, %v607_v33, %v588_v7 }
 0x605   : > { %v634_v36 = vmul.f32 %v626_v25, %v614_v34  ;;  %v633_v37 = vmul.f32 %v622_v26, %v613_v35 }
 0x607   : > { %646 = vrot.lane.b32.xlu0 %v634_v36, %s1486_s19  ;;  %644 = vrot.lane.b32.xlu1 %v633_v37, %s1486_s19  ;;  %v611_v38 = vpop.permute.xlu1 %610 }
 0x608   : > { %v615_v39 = vsel %vm374_vm3, %v611_v38, %v590_v11 }
 0x609   : > { %v635_v40 = vmul.f32 %v630_v27, %v615_v39 }
 0x60b   : > { %648 = vrot.lane.b32.xlu1 %v635_v40, %s1486_s19  ;;  %s1492_s19 = smov [#allocation3]  }
 0x60c   : > { %s1417_s20 = sshll.u32 %s1492_s19, 4  ;;  %s1418_s20 = int_to_ptr.vmem [resolvable:$false] %s1417_s20 }
 0x60d   : > { %s1419_s26 = scalar_lea.vmem %s1418_s20, 128 }
 0x675   : > { %v643_v41 = vpop.permute.xlu0 %642 }
 0x676   : > { %v654_v42 = vsel %vm591_vm7, %v643_v41, 0.0 }
 0x677   : > { %v1745_v43 = vadd.f32 %v654_v42, %v587_v0  ;;  %v366_v0 = vld [vmem:[%s1923_s1 + $0x8] sm:$0xff] }
 0x679   : > { %663 = vrot.lane.b32.xlu0 %v1745_v43, %s1478_s28  ;;  %v647_v45 = vpop.permute.xlu0 %646  ;;  %v645_v46 = vpop.permute.xlu1 %644 }
 0x67a   : > { %v656_v47 = vsel %vm591_vm7, %v647_v45, 0.0  ;;  %v655_v48 = vsel %vm591_vm7, %v645_v46, 0.0 }
 0x67b   : > { %v1749_v49 = vadd.f32 %v656_v47, %v589_v8  ;;  %v1751_v50 = vadd.f32 %v655_v48, %v588_v7  ;;  %v1487_v8 = vmov 0.0  }
 0x67c   : > { %1304 = vmatprep.subr.mxu1 %v1487_v8  ;;  %1306 = vmatprep.mubr.msk.f32.mxu1 %vm1488_vm8, %v1487_v8 }
 0x67d   : > { %669 = vrot.lane.b32.xlu0 %v1749_v49, %s1478_s28  ;;  %666 = vrot.lane.b32.xlu1 %v1751_v50, %s1478_s28  ;;  %v649_v51 = vpop.permute.xlu1 %648 }
 0x67e   : > { %v657_v52 = vsel %vm591_vm7, %v649_v51, 0.0  ;;  %1305 = vmatpush3.msk.msra.mxu1 %vm265_vm1, %v1585_v1  ;;  %1317 = vmatprep.mubr.msk.f32.mxu0 %vm1488_vm8, %v1487_v8 }
 0x67f   : > { %v1757_v53 = vadd.f32 %v657_v52, %v590_v11  ;;  %1307 = vmatmul.mubr.msk.f32.vlgmr.msra.gmra.mrb[0].mxu1 %vm252_vm0, %v770_v9  ;;  %1320 = vmatprep.subr.mxu1 %v1487_v8  ;;  %v1265_v52 = vld [vmem:[%s1927_s5 + $0x4] sm:$0xf] }
 0x680   : > { %1322 = vmatprep.mubr.msk.f32.mxu1 %vm1488_vm8, %v1487_v8 }
 0x681   : > { %672 = vrot.lane.b32.xlu1 %v1757_v53, %s1478_s28  ;;  %917 = vrot.lane.b32.xlu0 %v1585_v1, %s1478_s28 }
 0x685   : > { %688 = vperm.xlu1 %1409, %v1615_v13   ;;  %692 = vperm.xlu0 %1410, %v1625_v15  }
 0x689   : > { %696 = vperm.xlu1 %1409, %v1637_v17   ;;  %1412 = vset.pattern.permute.xlu0 %v1477_v5 }
 0x68d   : > { %700 = vperm.xlu1 %1409, %v1630_v16  }
 0x691   : > { %1411 = vset.pattern.permute.xlu1 %v1477_v5 }
 0x6eb   : > { %v664_v54 = vpop.permute.xlu0 %663 }
 0x6ec   : > { %v665_v55 = vsel %vm374_vm3, %v664_v54, %v1745_v43 }
 0x6ed   : > { %675 = vrot.lane.b32.xlu0 %v665_v55, %s1478_s28 }
 0x6ef   : > { %v670_v56 = vpop.permute.xlu0 %669  ;;  %v667_v57 = vpop.permute.xlu1 %666 }
 0x6f0   : > { %v671_v58 = vsel %vm374_vm3, %v670_v56, %v1749_v49  ;;  %v668_v59 = vsel %vm374_vm3, %v667_v57, %v1751_v50  ;;  %v1268_v56 = vld [vmem:[%s1927_s5 + $0x8] sm:$0xf] }
 0x6f1   : > { %679 = vrot.lane.b32.xlu0 %v671_v58, %s1478_s28  ;;  %677 = vrot.lane.b32.xlu1 %v668_v59, %s1478_s28 }
 0x6f3   : > { %v673_v60 = vpop.permute.xlu1 %672  ;;  %v918_v5 = vpop.permute.xlu0 %917 }
 0x6f4   : > { %v674_v61 = vsel %vm374_vm3, %v673_v60, %v1757_v53  ;;  %v919_v62 = vsel %vm374_vm3, %v918_v5, %v1585_v1 }
 0x6f5   : > { %681 = vrot.lane.b32.xlu1 %v674_v61, %s1478_s28  ;;  %920 = vrot.lane.b32.xlu0 %v919_v62, %s1478_s28  ;;  %v765_v62 = vld [vmem:[%s1926_s4] sm:$0xf]  ;;  %s242_s28 = scalar_lea.vmem [#allocation3], %s1255_s12 }
 0x6f6   : > { %s1192_s14 = sshll.u32 %s242_s28, 4  ;;  %s1882_s14 = int_to_ptr.vmem [resolvable:$true] %s1192_s14 }
 0x6f7   : > { %s1413_s25 = scalar_lea.vmem %s1882_s14, 64  ;;  %p1420_p0 = scmp.lt.s32.totalorder %s1882_s14, %s1418_s20 }
 0x6f8   : > { %p1414_p11 = scmp.ne.s32.totalorder %s1882_s14, %s1413_s25  ;;  %p1421_p1 = scmp.lt.s32.totalorder %s1419_s26, %s1413_s25 }
 0x6f9   : > { %735 = vperm.xlu1 %1411, %v365_v63   ;;  %740 = vperm.xlu0 %1412, %v366_v0   ;;  %v1271_v63 = vld [vmem:[%s1927_s5 + $0xc] sm:$0xf] }
 0x6fa   : > { %p1415_p12 = pnand %p1414_p11, %p1566_p5  ;;  %p1422_p2 = por %p1421_p1, %p1420_p0 }
 0x6fc   : > { %p1416_p13 = pneg %p1415_p12 }
 0x6fd   : > { %745 = vperm.xlu1 %1411, %v367_v2  }
 0x6fe   : > { %p1423_p3 = pnand %p1422_p2, %p1416_p13 }
 0x701   : > { %750 = vperm.xlu1 %1411, %v368_v3  }
 0x704   : > { %v689_v4 = vpop.permute.xlu1 %688  ;;  %v693_v7 = vpop.permute.xlu0 %692 }
 0x708   : > { %v697_v6 = vpop.permute.xlu1 %696 }
 0x70c   : > { %v701_v10 = vpop.permute.xlu1 %700 }
 0x752   : > { %v840_v0 = vpop.f32.mrb[0].mxu1 }
 0x753   : > { %v1308_v2 = vpop.f32.mrb[1].mxu1 }
 0x75f   : > { %v676_v11 = vpop.permute.xlu0 %675 }
 0x760   : > { %v683_v12 = vsel %vm374_vm3, %v676_v11, %v1745_v43 }
 0x761   : > { %v703_v14 = vmul.f32 %v689_v4, %v683_v12 }
 0x763   : > { %v680_v18 = vpop.permute.xlu0 %679  ;;  %713 = vrot.lane.b32.xlu0 %v703_v14, %s1489_s15  ;;  %v678_v19 = vpop.permute.xlu1 %677 }
 0x764   : > { %v685_v20 = vsel %vm374_vm3, %v680_v18, %v1749_v49  ;;  %v684_v21 = vsel %vm374_vm3, %v678_v19, %v1751_v50 }
 0x765   : > { %v705_v22 = vmul.f32 %v697_v6, %v685_v20  ;;  %v704_v23 = vmul.f32 %v693_v7, %v684_v21 }
 0x767   : > { %717 = vrot.lane.b32.xlu0 %v705_v22, %s1489_s15  ;;  %715 = vrot.lane.b32.xlu1 %v704_v23, %s1489_s15  ;;  %v682_v25 = vpop.permute.xlu1 %681  ;;  %v921_v26 = vpop.permute.xlu0 %920 }
 0x768   : > { %v686_v27 = vsel %vm374_vm3, %v682_v25, %v1757_v53  ;;  %v922_v28 = vsel %vm374_vm3, %v921_v26, %v1585_v1 }
 0x769   : > { %v706_v29 = vmul.f32 %v701_v10, %v686_v27 }
 0x76b   : > { %924 = vrot.lane.b32.xlu0 %v922_v28, %s1480_s16  ;;  %719 = vrot.lane.b32.xlu1 %v706_v29, %s1489_s15  ;;  %s1880_s16 = scalar_lea.hbm %s1928_s6, %s1275_s13 }
 0x76f   : > { %1093 = vrot.lane.b32.xlu0 %v922_v28, %s1491_s18  ;;  %1007 = vrot.lane.b32.xlu1 %v922_v28, %s1482_s17  ;;  %s1179_s17 = scalar_lea.sflag [#allocation4], %s240_s11 }
 0x778   : > { %v736_v30 = vpop.permute.xlu1 %735  ;;  %v741_v32 = vpop.permute.xlu0 %740 }
 0x779   : > { %v753_v1 = vmul.f32 %v736_v30, %v1615_v13  ;;  %v754_v45 = vmul.f32 %v741_v32, %v1625_v15 }
 0x77c   : > { %v746_v31 = vpop.permute.xlu1 %745 }
 0x77d   : > { %v755_v42 = vmul.f32 %v746_v31, %v1637_v17 }
 0x780   : > { %v751_v33 = vpop.permute.xlu1 %750 }
 0x781   : > { %v756_v17 = vmul.f32 %v751_v33, %v1630_v16 }
 0x7d5   : > { %v714_v34 = vpop.permute.xlu0 %713 }
 0x7d6   : > { %v725_v35 = vsel %vm662_vm9, %v714_v34, 0.0 }
 0x7d7   : > { %v729_v36 = vadd.f32 %v725_v35, %v1745_v43 }
 0x7d9   : > { %v757_v37 = vadd.f32 %v753_v1, %v729_v36  ;;  %v718_v38 = vpop.permute.xlu0 %717  ;;  %v716_v39 = vpop.permute.xlu1 %715 }
 0x7da   : > { %v727_v40 = vsel %vm662_vm9, %v718_v38, 0.0  ;;  %v726_v41 = vsel %vm662_vm9, %v716_v39, 0.0 }
 0x7db   : > { %761 = vst.msk [vmem:[#allocation2] sm:$0xff] %vm354_vm2, %v757_v37  ;;  %v731_v46 = vadd.f32 %v727_v40, %v1749_v49  ;;  %v730_v13 = vadd.f32 %v726_v41, %v1751_v50 }
 0x7dd   : > { %v759_v43 = vadd.f32 %v755_v42, %v731_v46  ;;  %v758_v47 = vadd.f32 %v754_v45, %v730_v13  ;;  %v925_v48 = vpop.permute.xlu0 %924  ;;  %v720_v51 = vpop.permute.xlu1 %719 }
 0x7de   : > { %v927_v54 = vsel %vm373_vm4, %v925_v48, 0.0  ;;  %v728_v15 = vsel %vm662_vm9, %v720_v51, 0.0 }
 0x7df   : > { %763 = vst.msk [vmem:[#allocation2 + $0x10] sm:$0xff] %vm354_vm2, %v759_v43  ;;  %762 = vst.msk [vmem:[#allocation2 + $0x8] sm:$0xff] %vm354_vm2, %v758_v47  ;;  %v732_v49 = vadd.f32 %v728_v15, %v1757_v53  ;;  %1321 = vmatpush3.msk.msra.mxu1 %vm265_vm1, %v927_v54 }
 0x7e0   : > { %1323 = vmatmul.mubr.msk.f32.vlgmr.msra.gmra.mrb[2].mxu1 %vm252_vm0, %v1265_v52  ;;  %1325 = vmatprep.subr.mxu1 %v1487_v8 }
 0x7e1   : > { %v760_v50 = vadd.f32 %v756_v17, %v732_v49  ;;  %v1008_v55 = vpop.permute.xlu1 %1007  ;;  %1327 = vmatprep.mubr.msk.f32.mxu1 %vm1488_vm8, %v1487_v8  ;;  %v1094_v53 = vpop.permute.xlu0 %1093 }
 0x7e2   : > { %v1010_v16 = vsel %vm449_vm5, %v1008_v55, 0.0  ;;  %v766_v57 = vld [vmem:[#allocation2] sm:$0xff]  ;;  %v1096_v60 = vsel %vm1090_vm10, %v1094_v53, 0.0 }
 0x7e3   : > { %764 = vst.msk [vmem:[#allocation2 + $0x18] sm:$0xff] %vm354_vm2, %v760_v50  ;;  %1326 = vmatpush3.msk.msra.mxu1 %vm265_vm1, %v1010_v16 }
 0x7e4   : > { %1330 = vmatprep.subr.mxu1 %v1487_v8 }
 0x7e6   : > { %v767_v58 = vld [vmem:[#allocation2 + $0x8] sm:$0xff]  ;;  %v768_v5 = vld [vmem:[#allocation2 + $0x10] sm:$0xff] }
 0x7e7   : > { %v1336_v59 = vpack.c.bf16 %v767_v58, %v766_v57 }
 0x7e8   : > { %1328 = vmatmul.mubr.msk.f32.vlgmr.msra.gmra.mrb[2].mxu1 %vm252_vm0, %v1268_v56 }
 0x7e9   : > { %1331 = vmatpush3.msk.msra.mxu1 %vm265_vm1, %v1096_v60  ;;  %1337 = vmatpush3.bf16.msra.mxu0 %v1336_v59 }
 0x7ea   : > { %1338 = vmatprep.subr.bf16.mxu0 %v1490_v24  ;;  %v769_v44 = vld [vmem:[#allocation2 + $0x18] sm:$0xff]  ;;  %1332 = vmatprep.mubr.msk.f32.mxu1 %vm1488_vm8, %v1487_v8 }
 0x7eb   : > { %v1339_v61 = vpack.c.bf16 %v769_v44, %v768_v5 }
 0x7ed   : > { %1340 = vmatpush3.bf16.msra.mxu0 %v1339_v61 }
 0x7f0   : > { %1318 = vmatmul.mubr.msk.f32.vlgmr.msra.gmra.mrb[4].mxu0 %vm354_vm2, %v765_v62  ;;  %1333 = vmatmul.mubr.msk.f32.vlgmr.msra.gmra.mrb[2].mxu1 %vm252_vm0, %v1271_v63 }
 0x8c3   : > { %v913_v3 = vpop.f32.mrb[4].mxu0  ;;  %v1171_v4 = vpop.f32.mrb[2].mxu1 }
 0x8c4   : > { %v914_v6 = vadd.f32 %v913_v3, %v840_v0  ;;  %v1319_v7 = vpop.f32.mrb[5].mxu0  ;;  %v1334_v8 = vpop.f32.mrb[3].mxu1 }
 0x8c6   : > { %v1342_v9 = vadd.f32 %v1171_v4, %v914_v6 }
 0x8c8   : > { %1177 = vst.msk [vmem:[%s242_s28] sm:$0xf] %vm1176_vm11, %v1342_v9 }
 0x8c9   : > { %1426 = shalt.err (!%p1423_p3)
}
 0x8ca   : > { %s1427_s29 = scalar_lea.hbm %s1880_s16, 64  ;;  %s1431_s11 = scalar_lea.hbm %s1928_s6, 128 }
 0x8cb   : > { %p1428_p4 = scmp.ne.s32.totalorder %s1880_s16, %s1427_s29  ;;  %p1432_p9 = scmp.lt.u32.totalorder %s1880_s16, %s1928_s6 }
 0x8cc   : > { %p1433_p10 = scmp.lt.u32.totalorder %s1431_s11, %s1427_s29  ;;  %p1435_p12 = scmp.lt.u32.totalorder %s1427_s29, %s1880_s16 }
 0x8cd   : > { %p1429_p7 = pnand %p1428_p4, %p1566_p5 }
 0x8ce   : > { %p1434_p11 = por %p1433_p10, %p1432_p9 }
 0x8cf   : > { %p1430_p8 = pneg %p1429_p7 }
 0x8d0   : > { %p1436_p13 = por %p1435_p12, %p1434_p11 }
 0x8d2   : > { %p1437_p0 = pnand %p1436_p13, %p1430_p8 }
 0x8d4   : > { %1440 = shalt.err (!%p1437_p0)
}
 0x8d5   : > { %1347 = dma.vmem_to_hbm [thread:$0]  (%p1566_p5), %s1882_s14, 64, %s1880_s16, %s1179_s17  }
 0x8d6 PF: > { %p1353_p1 = scmp.ge.s32.totalorder %s1475_s24, 2  ;;  %s1204_s28 = sand.u32 1, %s1463_s21  }
 0x8d7   : > { %s1205_s15 = scalar_lea.sflag [#allocation4], %s1204_s28 }
 0x8d8   : > { %p1350_p2 = pnand %p1353_p1, %p1570_p6 }
 0x8da   : > { %1458 = dma.done.wait (!%p1350_p2), %s1205_s15, 64  }
 0x8db   : > { %1460 = vsyncadd (!%p1350_p2), %s1205_s15, 4294967232  ;;  %p16_p3 = scmp.ge.s32.totalorder %s1553_s27, 4   ;;  %s1931_s21 = smov %s1467_s22 }
 0x8dc   : > { %s1932_s22 = smov %s1471_s23  ;;  %s1933_s23 = smov %s1564_s30 }
 0x8dd   : > { %s1934_s24 = smov %s1553_s27  ;;  %18 = sbr.rel (!%p16_p3) target bundleno = 3 (0x3), region = 82 }
 0x8e4   :  { %1210 = vsyncpa [#allocation4], 1 }
 0x8e5   :  { %1212 = vsyncpa [#allocation4 + $0x1], 1 }

</bundles_post_ra>
